<compile_context>
chip_gen: v6e
topology: v6e:2x2x1
jax: 0.10.0
libtpu: 0.0.40
codegen_flags: <defaults>
</compile_context>

<pallas_src>
import jax
import jax.numpy as jnp
from jax import lax
from jax.experimental import pallas as pl
from jax.experimental.pallas import tpu as pltpu

ADAPT_LAYERS = (3, 6, 9, 12)
N_ADAPT = len(ADAPT_LAYERS)


def _round_up(x, m):
    return ((x + m - 1) // m) * m


def _adapter_kernel(wd_ref, wu_ref, h0_ref, h1_ref, h2_ref, h3_ref, x_ref, o_ref, lat_ref):
    """One token tile per grid step; 4 down-projections + one fused up-projection."""
    compute_dtype = wd_ref.dtype
    Ch = wd_ref.shape[-1]
    h_refs = (h0_ref, h1_ref, h2_ref, h3_ref)

    # DownSamplers: latent_i = relu(hidden_i @ Wd_i), stored bf16 into the shared (tm, 4*Ch)
    # scratch -> the torch.cat of the reference becomes free.
    for i in range(N_ADAPT):
        hi = h_refs[i][...].astype(compute_dtype)                    # in-kernel cast (VPU filler)
        lat = jnp.dot(hi, wd_ref[i], preferred_element_type=jnp.float32)
        lat_ref[:, i * Ch:(i + 1) * Ch] = jnp.maximum(lat, 0.0).astype(compute_dtype)

    # UpSampler: single MXU matmul over the concatenated latent (4-way reduction accumulates
    # inside the MXU f32 accumulator), then ReLU + residual add, lane-dense store of width C.
    up = jnp.dot(lat_ref[...], wu_ref[...], preferred_element_type=jnp.float32)
    o_ref[...] = (x_ref[...].astype(jnp.float32) + jnp.maximum(up, 0.0)).astype(o_ref.dtype)


def _select_config():
    """Per-generation (tm_target, vmem_limit_bytes, min_tiles)."""
    try:
        vmem_cap = pltpu.get_tpu_info().vmem_capacity_bytes
    except Exception:
        vmem_cap = 64 * 1024 * 1024  # be conservative (v7x-like)
    if vmem_cap >= 128 * 1024 * 1024:
        # v5e / v6e: 128 MiB VMEM -> bigger tiles amortize the ~0.35us per-step overhead.
        return 1024, 96 * 1024 * 1024, 1
    # v7x: 64 MiB physical VMEM per TC, 2 TCs -> moderate tiles, feed both cores.
    return 512, 48 * 1024 * 1024, 2


def _choose_tm(M, tm_target, min_tiles):
    if M <= 8 * min_tiles:
        return M                                   # tiny input: single full-extent block
    if min_tiles > 1 and M <= tm_target * min_tiles:
        # Generate-time small M on v7x: split across both TensorCores instead of idling one.
        return min(_round_up((M + min_tiles - 1) // min_tiles, 8), M)
    if M <= tm_target:
        return M                                   # full-extent block, no padding needed
    return tm_target                               # multiple of 8; ragged last tile is masked


def multi_level_adapter(x, hidden, wd, wu, *, tm=None, compute_dtype=jnp.bfloat16, out_dtype=None):
    """x: (B,S,C); hidden: list of >=12 arrays (B,S,C); wd: (4,C,C//2); wu: (4,C//2,C)."""
    B, S, C = x.shape
    Ch = wd.shape[-1]
    assert wd.shape == (N_ADAPT, C, Ch) and wu.shape == (N_ADAPT, Ch, C)
    M = B * S
    # NOTE: output dtype follows x by default; pass out_dtype=jnp.bfloat16 on HBM-bound parts
    # (v6e) if downstream tolerates a bf16 residual stream (~25% less HBM traffic).
    out_dtype = x.dtype if out_dtype is None else out_dtype

    tm_target, vmem_limit, min_tiles = _select_config()
    if tm is None:
        tm = _choose_tm(M, tm_target, min_tiles)
    tm = min(tm, M)
    n_tiles = pl.cdiv(M, tm)

    # Activations streamed in native dtype: no host-side astype pass, no host-side jnp.pad.
    hs = [hidden[l - 1].reshape(M, C) for l in ADAPT_LAYERS]
    x2 = x.reshape(M, C)
    wd_c = wd.astype(compute_dtype)                                # tiny; host cast negligible
    wu_c = wu.reshape(N_ADAPT * Ch, C).astype(compute_dtype)       # concat fusion: (4*Ch, C)

    token_spec = pl.BlockSpec((tm, C), lambda i: (i, 0))

    def run(single_buffer_weights):
        if single_buffer_weights:
            # Constant index_map -> only one DMA ever happens; single buffer halves weight VMEM.
            wd_spec = pl.BlockSpec((N_ADAPT, C, Ch), lambda i: (0, 0, 0),
                                   pipeline_mode=pl.Buffered(1))
            wu_spec = pl.BlockSpec((N_ADAPT * Ch, C), lambda i: (0, 0),
                                   pipeline_mode=pl.Buffered(1))
        else:
            wd_spec = pl.BlockSpec((N_ADAPT, C, Ch), lambda i: (0, 0, 0))
            wu_spec = pl.BlockSpec((N_ADAPT * Ch, C), lambda i: (0, 0))

        return pl.pallas_call(
            _adapter_kernel,
            out_shape=jax.ShapeDtypeStruct((M, C), out_dtype),
            grid_spec=pltpu.PrefetchScalarGridSpec(
                num_scalar_prefetch=0,
                grid=(n_tiles,),
                in_specs=[
                    wd_spec,      # wd (4, C, Ch), VMEM-resident
                    wu_spec,      # wu (4*Ch, C),  VMEM-resident
                    token_spec,   # hidden[3-1]
                    token_spec,   # hidden[6-1]
                    token_spec,   # hidden[9-1]
                    token_spec,   # hidden[12-1]
                    token_spec,   # residual x
                ],
                out_specs=token_spec,
                scratch_shapes=[pltpu.VMEM((tm, N_ADAPT * Ch), compute_dtype)],
            ),
            compiler_params=pltpu.CompilerParams(
                dimension_semantics=("parallel",),
                vmem_limit_bytes=vmem_limit,
            ),
        )(wd_c, wu_c, *hs, x2)

    try:
        out = run(single_buffer_weights=True)
    except Exception:
        # Older jax without BlockSpec pipeline_mode support: default double-buffered weights.
        out = run(single_buffer_weights=False)

    return out.reshape(B, S, C)


def _reference(x, hidden, wd, wu, compute_dtype=jnp.bfloat16):
    """Mirrors the kernel's numerics (bf16 inputs / bf16 latent, f32 accumulation)."""
    f32 = jnp.float32
    latents = []
    for i, l in enumerate(ADAPT_LAYERS):
        h = hidden[l - 1].astype(compute_dtype).astype(f32)
        w = wd[i].astype(compute_dtype).astype(f32)
        lat = jnp.maximum(jnp.matmul(h, w, precision=lax.Precision.HIGHEST), 0.0)
        latents.append(lat.astype(compute_dtype).astype(f32))
    latent_features = jnp.concatenate(latents, axis=-1)
    wu_cat = jnp.concatenate(
        [wu[i].astype(compute_dtype).astype(f32) for i in range(N_ADAPT)], axis=0
    )
    up = jnp.matmul(latent_features, wu_cat, precision=lax.Precision.HIGHEST)
    return (x.astype(f32) + jnp.maximum(up, 0.0)).astype(x.dtype)


if __name__ == "__main__":
    B, S, C = 2, 8, 32          # batch, seq, hidden (c_in)
    Ch = C // 2                 # DownSampler reduction = 2
    n_layers = 12               # hidden-state list length (adapt layers 3, 6, 9, 12)

    key = jax.random.PRNGKey(0)
    kx, kh, kwd, kwu = jax.random.split(key, 4)

    x = jax.random.normal(kx, (B, S, C), dtype=jnp.float32)
    hidden = [
        jax.random.normal(jax.random.fold_in(kh, i), (B, S, C), dtype=jnp.float32)
        for i in range(n_layers)
    ]
    # Deterministic synthetic weights (no checkpoint load).
    wd = 0.1 * jax.random.normal(kwd, (N_ADAPT, C, Ch), dtype=jnp.float32)
    wu = 0.1 * jax.random.normal(kwu, (N_ADAPT, Ch, C), dtype=jnp.float32)

    out = multi_level_adapter(x, hidden, wd, wu)
    out = jax.block_until_ready(out)

    ref = _reference(x, hidden, wd, wu)
    assert out.shape == (B, S, C)
    assert jnp.allclose(out, ref, atol=2e-3, rtol=2e-3), "mismatch vs reference"

    print("KERNEL_OK")
</pallas_src>

<mosaic_0001>
module attributes {stable_mosaic.version = 11 : i64} {
  func.func @_adapter_kernel(%arg0: i32, %arg1: memref<4x32x16xbf16, #tpu.memory_space<vmem>>, %arg2: memref<64x32xbf16, #tpu.memory_space<vmem>>, %arg3: memref<16x32xf32, #tpu.memory_space<vmem>>, %arg4: memref<16x32xf32, #tpu.memory_space<vmem>>, %arg5: memref<16x32xf32, #tpu.memory_space<vmem>>, %arg6: memref<16x32xf32, #tpu.memory_space<vmem>>, %arg7: memref<16x32xf32, #tpu.memory_space<vmem>>, %arg8: memref<16x32xf32, #tpu.memory_space<vmem>>, %arg9: memref<16x64xbf16, #tpu.memory_space<vmem>>) attributes {dimension_semantics = [#tpu.dimension_semantics<parallel>], iteration_bounds = array<i64: 1>, scalar_prefetch = 0 : i64, scratch_operands = 1 : i64, tpu.core_type = #tpu.core_type<tc>, window_params = [{pipeline_mode = #tpu.pipeline_mode<synchronous>, transform_indices = @transform_0, window_bounds = array<i64: 4, 32, 16>}, {pipeline_mode = #tpu.pipeline_mode<synchronous>, transform_indices = @transform_1, window_bounds = array<i64: 64, 32>}, {transform_indices = @transform_2, window_bounds = array<i64: 16, 32>}, {transform_indices = @transform_3, window_bounds = array<i64: 16, 32>}, {transform_indices = @transform_4, window_bounds = array<i64: 16, 32>}, {transform_indices = @transform_5, window_bounds = array<i64: 16, 32>}, {transform_indices = @transform_6, window_bounds = array<i64: 16, 32>}, {transform_indices = @transform_7, window_bounds = array<i64: 16, 32>}]} {
    %c0 = arith.constant 0 : index
    %c0_0 = arith.constant 0 : index
    %0 = vector.load %arg3[%c0, %c0_0] : memref<16x32xf32, #tpu.memory_space<vmem>>, vector<16x32xf32>
    %1 = arith.truncf %0 : vector<16x32xf32> to vector<16x32xbf16>
    %c0_1 = arith.constant 0 : index
    %c0_2 = arith.constant 0 : index
    %c0_3 = arith.constant 0 : index
    %2 = vector.load %arg1[%c0_1, %c0_2, %c0_3] : memref<4x32x16xbf16, #tpu.memory_space<vmem>>, vector<1x32x16xbf16>
    %3 = vector.shape_cast %2 : vector<1x32x16xbf16> to vector<32x16xbf16>
    %cst = arith.constant dense<0.000000e+00> : vector<16x16xf32>
    %4 = tpu.matmul %1, %3, %cst {dimension_numbers = #tpu.dot_dimension_numbers<[1], [0], [0], [1], [0, 0, 1, 1], [], []>} : vector<16x32xbf16>, vector<32x16xbf16>, vector<16x16xf32> -> vector<16x16xf32>
    %cst_4 = arith.constant 0.000000e+00 : f32
    %5 = vector.broadcast %cst_4 : f32 to vector<16x16xf32>
    %6 = arith.maximumf %4, %5 : vector<16x16xf32>
    %7 = arith.truncf %6 : vector<16x16xf32> to vector<16x16xbf16>
    %c0_5 = arith.constant 0 : index
    %c0_6 = arith.constant 0 : index
    %8 = vector.load %arg9[%c0_5, %c0_6] : memref<16x64xbf16, #tpu.memory_space<vmem>>, vector<16x16xbf16>
    tpu.vector_store %arg9[%c0_5, %c0_6], %7 {strides = array<i32>} : memref<16x64xbf16, #tpu.memory_space<vmem>>, vector<16x16xbf16>,
    %c0_7 = arith.constant 0 : index
    %c0_8 = arith.constant 0 : index
    %9 = vector.load %arg4[%c0_7, %c0_8] : memref<16x32xf32, #tpu.memory_space<vmem>>, vector<16x32xf32>
    %10 = arith.truncf %9 : vector<16x32xf32> to vector<16x32xbf16>
    %c1 = arith.constant 1 : index
    %c0_9 = arith.constant 0 : index
    %c0_10 = arith.constant 0 : index
    %11 = vector.load %arg1[%c1, %c0_9, %c0_10] : memref<4x32x16xbf16, #tpu.memory_space<vmem>>, vector<1x32x16xbf16>
    %12 = vector.shape_cast %11 : vector<1x32x16xbf16> to vector<32x16xbf16>
    %cst_11 = arith.constant dense<0.000000e+00> : vector<16x16xf32>
    %13 = tpu.matmul %10, %12, %cst_11 {dimension_numbers = #tpu.dot_dimension_numbers<[1], [0], [0], [1], [0, 0, 1, 1], [], []>} : vector<16x32xbf16>, vector<32x16xbf16>, vector<16x16xf32> -> vector<16x16xf32>
    %cst_12 = arith.constant 0.000000e+00 : f32
    %14 = vector.broadcast %cst_12 : f32 to vector<16x16xf32>
    %15 = arith.maximumf %13, %14 : vector<16x16xf32>
    %16 = arith.truncf %15 : vector<16x16xf32> to vector<16x16xbf16>
    %c0_13 = arith.constant 0 : index
    %c16 = arith.constant 16 : index
    %17 = vector.load %arg9[%c0_13, %c16] : memref<16x64xbf16, #tpu.memory_space<vmem>>, vector<16x16xbf16>
    tpu.vector_store %arg9[%c0_13, %c16], %16 {strides = array<i32>} : memref<16x64xbf16, #tpu.memory_space<vmem>>, vector<16x16xbf16>,
    %c0_14 = arith.constant 0 : index
    %c0_15 = arith.constant 0 : index
    %18 = vector.load %arg5[%c0_14, %c0_15] : memref<16x32xf32, #tpu.memory_space<vmem>>, vector<16x32xf32>
    %19 = arith.truncf %18 : vector<16x32xf32> to vector<16x32xbf16>
    %c2 = arith.constant 2 : index
    %c0_16 = arith.constant 0 : index
    %c0_17 = arith.constant 0 : index
    %20 = vector.load %arg1[%c2, %c0_16, %c0_17] : memref<4x32x16xbf16, #tpu.memory_space<vmem>>, vector<1x32x16xbf16>
    %21 = vector.shape_cast %20 : vector<1x32x16xbf16> to vector<32x16xbf16>
    %cst_18 = arith.constant dense<0.000000e+00> : vector<16x16xf32>
    %22 = tpu.matmul %19, %21, %cst_18 {dimension_numbers = #tpu.dot_dimension_numbers<[1], [0], [0], [1], [0, 0, 1, 1], [], []>} : vector<16x32xbf16>, vector<32x16xbf16>, vector<16x16xf32> -> vector<16x16xf32>
    %cst_19 = arith.constant 0.000000e+00 : f32
    %23 = vector.broadcast %cst_19 : f32 to vector<16x16xf32>
    %24 = arith.maximumf %22, %23 : vector<16x16xf32>
    %25 = arith.truncf %24 : vector<16x16xf32> to vector<16x16xbf16>
    %c0_20 = arith.constant 0 : index
    %c32 = arith.constant 32 : index
    %26 = vector.load %arg9[%c0_20, %c32] : memref<16x64xbf16, #tpu.memory_space<vmem>>, vector<16x16xbf16>
    tpu.vector_store %arg9[%c0_20, %c32], %25 {strides = array<i32>} : memref<16x64xbf16, #tpu.memory_space<vmem>>, vector<16x16xbf16>,
    %c0_21 = arith.constant 0 : index
    %c0_22 = arith.constant 0 : index
    %27 = vector.load %arg6[%c0_21, %c0_22] : memref<16x32xf32, #tpu.memory_space<vmem>>, vector<16x32xf32>
    %28 = arith.truncf %27 : vector<16x32xf32> to vector<16x32xbf16>
    %c3 = arith.constant 3 : index
    %c0_23 = arith.constant 0 : index
    %c0_24 = arith.constant 0 : index
    %29 = vector.load %arg1[%c3, %c0_23, %c0_24] : memref<4x32x16xbf16, #tpu.memory_space<vmem>>, vector<1x32x16xbf16>
    %30 = vector.shape_cast %29 : vector<1x32x16xbf16> to vector<32x16xbf16>
    %cst_25 = arith.constant dense<0.000000e+00> : vector<16x16xf32>
    %31 = tpu.matmul %28, %30, %cst_25 {dimension_numbers = #tpu.dot_dimension_numbers<[1], [0], [0], [1], [0, 0, 1, 1], [], []>} : vector<16x32xbf16>, vector<32x16xbf16>, vector<16x16xf32> -> vector<16x16xf32>
    %cst_26 = arith.constant 0.000000e+00 : f32
    %32 = vector.broadcast %cst_26 : f32 to vector<16x16xf32>
    %33 = arith.maximumf %31, %32 : vector<16x16xf32>
    %34 = arith.truncf %33 : vector<16x16xf32> to vector<16x16xbf16>
    %c0_27 = arith.constant 0 : index
    %c48 = arith.constant 48 : index
    %35 = vector.load %arg9[%c0_27, %c48] : memref<16x64xbf16, #tpu.memory_space<vmem>>, vector<16x16xbf16>
    tpu.vector_store %arg9[%c0_27, %c48], %34 {strides = array<i32>} : memref<16x64xbf16, #tpu.memory_space<vmem>>, vector<16x16xbf16>,
    %c0_28 = arith.constant 0 : index
    %c0_29 = arith.constant 0 : index
    %36 = vector.load %arg9[%c0_28, %c0_29] : memref<16x64xbf16, #tpu.memory_space<vmem>>, vector<16x64xbf16>
    %c0_30 = arith.constant 0 : index
    %c0_31 = arith.constant 0 : index
    %37 = vector.load %arg2[%c0_30, %c0_31] : memref<64x32xbf16, #tpu.memory_space<vmem>>, vector<64x32xbf16>
    %cst_32 = arith.constant dense<0.000000e+00> : vector<16x32xf32>
    %38 = tpu.matmul %36, %37, %cst_32 {dimension_numbers = #tpu.dot_dimension_numbers<[1], [0], [0], [1], [0, 0, 1, 1], [], []>} : vector<16x64xbf16>, vector<64x32xbf16>, vector<16x32xf32> -> vector<16x32xf32>
    %c0_33 = arith.constant 0 : index
    %c0_34 = arith.constant 0 : index
    %39 = vector.load %arg7[%c0_33, %c0_34] : memref<16x32xf32, #tpu.memory_space<vmem>>, vector<16x32xf32>
    %cst_35 = arith.constant 0.000000e+00 : f32
    %40 = vector.broadcast %cst_35 : f32 to vector<16x32xf32>
    %41 = arith.maximumf %38, %40 : vector<16x32xf32>
    %42 = arith.addf %39, %41 : vector<16x32xf32>
    %c0_36 = arith.constant 0 : index
    %c0_37 = arith.constant 0 : index
    %43 = vector.load %arg8[%c0_36, %c0_37] : memref<16x32xf32, #tpu.memory_space<vmem>>, vector<16x32xf32>
    tpu.vector_store %arg8[%c0_36, %c0_37], %42 {strides = array<i32>} : memref<16x32xf32, #tpu.memory_space<vmem>>, vector<16x32xf32>,
    return
  }
  func.func @transform_0(%arg0: i32) -> (i32, i32, i32) {
    %c0_i32 = arith.constant 0 : i32
    %c0_i32_0 = arith.constant 0 : i32
    %c0_i32_1 = arith.constant 0 : i32
    %c0_i32_2 = arith.constant 0 : i32
    return %c0_i32, %c0_i32_0, %c0_i32_1 : i32, i32, i32
  }
  func.func @transform_1(%arg0: i32) -> (i32, i32) {
    %c0_i32 = arith.constant 0 : i32
    %c0_i32_0 = arith.constant 0 : i32
    %c0_i32_1 = arith.constant 0 : i32
    return %c0_i32, %c0_i32_0 : i32, i32
  }
  func.func @transform_2(%arg0: i32) -> (i32, i32) {
    %c0_i32 = arith.constant 0 : i32
    %c0_i32_0 = arith.constant 0 : i32
    return %arg0, %c0_i32 : i32, i32
  }
  func.func @transform_3(%arg0: i32) -> (i32, i32) {
    %c0_i32 = arith.constant 0 : i32
    %c0_i32_0 = arith.constant 0 : i32
    return %arg0, %c0_i32 : i32, i32
  }
  func.func @transform_4(%arg0: i32) -> (i32, i32) {
    %c0_i32 = arith.constant 0 : i32
    %c0_i32_0 = arith.constant 0 : i32
    return %arg0, %c0_i32 : i32, i32
  }
  func.func @transform_5(%arg0: i32) -> (i32, i32) {
    %c0_i32 = arith.constant 0 : i32
    %c0_i32_0 = arith.constant 0 : i32
    return %arg0, %c0_i32 : i32, i32
  }
  func.func @transform_6(%arg0: i32) -> (i32, i32) {
    %c0_i32 = arith.constant 0 : i32
    %c0_i32_0 = arith.constant 0 : i32
    return %arg0, %c0_i32 : i32, i32
  }
  func.func @transform_7(%arg0: i32) -> (i32, i32) {
    %c0_i32 = arith.constant 0 : i32
    %c0_i32_0 = arith.constant 0 : i32
    return %arg0, %c0_i32 : i32, i32
  }
}

module attributes {stable_mosaic.version = 11 : i64} {
  func.func @_adapter_kernel(%arg0: i32, %arg1: memref<4x32x16xbf16, #tpu.memory_space<vmem>>, %arg2: memref<64x32xbf16, #tpu.memory_space<vmem>>, %arg3: memref<16x32xf32, #tpu.memory_space<vmem>>, %arg4: memref<16x32xf32, #tpu.memory_space<vmem>>, %arg5: memref<16x32xf32, #tpu.memory_space<vmem>>, %arg6: memref<16x32xf32, #tpu.memory_space<vmem>>, %arg7: memref<16x32xf32, #tpu.memory_space<vmem>>, %arg8: memref<16x32xf32, #tpu.memory_space<vmem>>, %arg9: memref<16x64xbf16, #tpu.memory_space<vmem>>) attributes {dimension_semantics = [#tpu.dimension_semantics<parallel>], iteration_bounds = array<i64: 1>, scalar_prefetch = 0 : i64, scratch_operands = 1 : i64, tpu.core_type = #tpu.core_type<tc>, window_params = [{pipeline_mode = #tpu.pipeline_mode<synchronous>, transform_indices = @transform_0, window_bounds = array<i64: 4, 32, 16>}, {pipeline_mode = #tpu.pipeline_mode<synchronous>, transform_indices = @transform_1, window_bounds = array<i64: 64, 32>}, {transform_indices = @transform_2, window_bounds = array<i64: 16, 32>}, {transform_indices = @transform_3, window_bounds = array<i64: 16, 32>}, {transform_indices = @transform_4, window_bounds = array<i64: 16, 32>}, {transform_indices = @transform_5, window_bounds = array<i64: 16, 32>}, {transform_indices = @transform_6, window_bounds = array<i64: 16, 32>}, {transform_indices = @transform_7, window_bounds = array<i64: 16, 32>}]} {
    %c0 = arith.constant 0 : index
    %c0_0 = arith.constant 0 : index
    %0 = vector.load %arg3[%c0, %c0_0] : memref<16x32xf32, #tpu.memory_space<vmem>>, vector<16x32xf32>
    %1 = arith.truncf %0 : vector<16x32xf32> to vector<16x32xbf16>
    %c0_1 = arith.constant 0 : index
    %c0_2 = arith.constant 0 : index
    %c0_3 = arith.constant 0 : index
    %2 = vector.load %arg1[%c0_1, %c0_2, %c0_3] : memref<4x32x16xbf16, #tpu.memory_space<vmem>>, vector<1x32x16xbf16>
    %3 = vector.shape_cast %2 : vector<1x32x16xbf16> to vector<32x16xbf16>
    %cst = arith.constant dense<0.000000e+00> : vector<16x16xf32>
    %4 = tpu.matmul %1, %3, %cst {dimension_numbers = #tpu.dot_dimension_numbers<[1], [0], [0], [1], [0, 0, 1, 1], [], []>} : vector<16x32xbf16>, vector<32x16xbf16>, vector<16x16xf32> -> vector<16x16xf32>
    %cst_4 = arith.constant 0.000000e+00 : f32
    %5 = vector.broadcast %cst_4 : f32 to vector<16x16xf32>
    %6 = arith.maximumf %4, %5 : vector<16x16xf32>
    %7 = arith.truncf %6 : vector<16x16xf32> to vector<16x16xbf16>
    %c0_5 = arith.constant 0 : index
    %c0_6 = arith.constant 0 : index
    %8 = vector.load %arg9[%c0_5, %c0_6] : memref<16x64xbf16, #tpu.memory_space<vmem>>, vector<16x16xbf16>
    tpu.vector_store %arg9[%c0_5, %c0_6], %7 {strides = array<i32>} : memref<16x64xbf16, #tpu.memory_space<vmem>>, vector<16x16xbf16>,
    %c0_7 = arith.constant 0 : index
    %c0_8 = arith.constant 0 : index
    %9 = vector.load %arg4[%c0_7, %c0_8] : memref<16x32xf32, #tpu.memory_space<vmem>>, vector<16x32xf32>
    %10 = arith.truncf %9 : vector<16x32xf32> to vector<16x32xbf16>
    %c1 = arith.constant 1 : index
    %c0_9 = arith.constant 0 : index
    %c0_10 = arith.constant 0 : index
    %11 = vector.load %arg1[%c1, %c0_9, %c0_10] : memref<4x32x16xbf16, #tpu.memory_space<vmem>>, vector<1x32x16xbf16>
    %12 = vector.shape_cast %11 : vector<1x32x16xbf16> to vector<32x16xbf16>
    %cst_11 = arith.constant dense<0.000000e+00> : vector<16x16xf32>
    %13 = tpu.matmul %10, %12, %cst_11 {dimension_numbers = #tpu.dot_dimension_numbers<[1], [0], [0], [1], [0, 0, 1, 1], [], []>} : vector<16x32xbf16>, vector<32x16xbf16>, vector<16x16xf32> -> vector<16x16xf32>
    %cst_12 = arith.constant 0.000000e+00 : f32
    %14 = vector.broadcast %cst_12 : f32 to vector<16x16xf32>
    %15 = arith.maximumf %13, %14 : vector<16x16xf32>
    %16 = arith.truncf %15 : vector<16x16xf32> to vector<16x16xbf16>
    %c0_13 = arith.constant 0 : index
    %c16 = arith.constant 16 : index
    %17 = vector.load %arg9[%c0_13, %c16] : memref<16x64xbf16, #tpu.memory_space<vmem>>, vector<16x16xbf16>
    tpu.vector_store %arg9[%c0_13, %c16], %16 {strides = array<i32>} : memref<16x64xbf16, #tpu.memory_space<vmem>>, vector<16x16xbf16>,
    %c0_14 = arith.constant 0 : index
    %c0_15 = arith.constant 0 : index
    %18 = vector.load %arg5[%c0_14, %c0_15] : memref<16x32xf32, #tpu.memory_space<vmem>>, vector<16x32xf32>
    %19 = arith.truncf %18 : vector<16x32xf32> to vector<16x32xbf16>
    %c2 = arith.constant 2 : index
    %c0_16 = arith.constant 0 : index
    %c0_17 = arith.constant 0 : index
    %20 = vector.load %arg1[%c2, %c0_16, %c0_17] : memref<4x32x16xbf16, #tpu.memory_space<vmem>>, vector<1x32x16xbf16>
    %21 = vector.shape_cast %20 : vector<1x32x16xbf16> to vector<32x16xbf16>
    %cst_18 = arith.constant dense<0.000000e+00> : vector<16x16xf32>
    %22 = tpu.matmul %19, %21, %cst_18 {dimension_numbers = #tpu.dot_dimension_numbers<[1], [0], [0], [1], [0, 0, 1, 1], [], []>} : vector<16x32xbf16>, vector<32x16xbf16>, vector<16x16xf32> -> vector<16x16xf32>
    %cst_19 = arith.constant 0.000000e+00 : f32
    %23 = vector.broadcast %cst_19 : f32 to vector<16x16xf32>
    %24 = arith.maximumf %22, %23 : vector<16x16xf32>
    %25 = arith.truncf %24 : vector<16x16xf32> to vector<16x16xbf16>
    %c0_20 = arith.constant 0 : index
    %c32 = arith.constant 32 : index
    %26 = vector.load %arg9[%c0_20, %c32] : memref<16x64xbf16, #tpu.memory_space<vmem>>, vector<16x16xbf16>
    tpu.vector_store %arg9[%c0_20, %c32], %25 {strides = array<i32>} : memref<16x64xbf16, #tpu.memory_space<vmem>>, vector<16x16xbf16>,
    %c0_21 = arith.constant 0 : index
    %c0_22 = arith.constant 0 : index
    %27 = vector.load %arg6[%c0_21, %c0_22] : memref<16x32xf32, #tpu.memory_space<vmem>>, vector<16x32xf32>
    %28 = arith.truncf %27 : vector<16x32xf32> to vector<16x32xbf16>
    %c3 = arith.constant 3 : index
    %c0_23 = arith.constant 0 : index
    %c0_24 = arith.constant 0 : index
    %29 = vector.load %arg1[%c3, %c0_23, %c0_24] : memref<4x32x16xbf16, #tpu.memory_space<vmem>>, vector<1x32x16xbf16>
    %30 = vector.shape_cast %29 : vector<1x32x16xbf16> to vector<32x16xbf16>
    %cst_25 = arith.constant dense<0.000000e+00> : vector<16x16xf32>
    %31 = tpu.matmul %28, %30, %cst_25 {dimension_numbers = #tpu.dot_dimension_numbers<[1], [0], [0], [1], [0, 0, 1, 1], [], []>} : vector<16x32xbf16>, vector<32x16xbf16>, vector<16x16xf32> -> vector<16x16xf32>
    %cst_26 = arith.constant 0.000000e+00 : f32
    %32 = vector.broadcast %cst_26 : f32 to vector<16x16xf32>
    %33 = arith.maximumf %31, %32 : vector<16x16xf32>
    %34 = arith.truncf %33 : vector<16x16xf32> to vector<16x16xbf16>
    %c0_27 = arith.constant 0 : index
    %c48 = arith.constant 48 : index
    %35 = vector.load %arg9[%c0_27, %c48] : memref<16x64xbf16, #tpu.memory_space<vmem>>, vector<16x16xbf16>
    tpu.vector_store %arg9[%c0_27, %c48], %34 {strides = array<i32>} : memref<16x64xbf16, #tpu.memory_space<vmem>>, vector<16x16xbf16>,
    %c0_28 = arith.constant 0 : index
    %c0_29 = arith.constant 0 : index
    %36 = vector.load %arg9[%c0_28, %c0_29] : memref<16x64xbf16, #tpu.memory_space<vmem>>, vector<16x64xbf16>
    %c0_30 = arith.constant 0 : index
    %c0_31 = arith.constant 0 : index
    %37 = vector.load %arg2[%c0_30, %c0_31] : memref<64x32xbf16, #tpu.memory_space<vmem>>, vector<64x32xbf16>
    %cst_32 = arith.constant dense<0.000000e+00> : vector<16x32xf32>
    %38 = tpu.matmul %36, %37, %cst_32 {dimension_numbers = #tpu.dot_dimension_numbers<[1], [0], [0], [1], [0, 0, 1, 1], [], []>} : vector<16x64xbf16>, vector<64x32xbf16>, vector<16x32xf32> -> vector<16x32xf32>
    %c0_33 = arith.constant 0 : index
    %c0_34 = arith.constant 0 : index
    %39 = vector.load %arg7[%c0_33, %c0_34] : memref<16x32xf32, #tpu.memory_space<vmem>>, vector<16x32xf32>
    %cst_35 = arith.constant 0.000000e+00 : f32
    %40 = vector.broadcast %cst_35 : f32 to vector<16x32xf32>
    %41 = arith.maximumf %38, %40 : vector<16x32xf32>
    %42 = arith.addf %39, %41 : vector<16x32xf32>
    %c0_36 = arith.constant 0 : index
    %c0_37 = arith.constant 0 : index
    %43 = vector.load %arg8[%c0_36, %c0_37] : memref<16x32xf32, #tpu.memory_space<vmem>>, vector<16x32xf32>
    tpu.vector_store %arg8[%c0_36, %c0_37], %42 {strides = array<i32>} : memref<16x32xf32, #tpu.memory_space<vmem>>, vector<16x32xf32>,
    return
  }
  func.func @transform_0(%arg0: i32) -> (i32, i32, i32) {
    %c0_i32 = arith.constant 0 : i32
    %c0_i32_0 = arith.constant 0 : i32
    %c0_i32_1 = arith.constant 0 : i32
    %c0_i32_2 = arith.constant 0 : i32
    return %c0_i32, %c0_i32_0, %c0_i32_1 : i32, i32, i32
  }
  func.func @transform_1(%arg0: i32) -> (i32, i32) {
    %c0_i32 = arith.constant 0 : i32
    %c0_i32_0 = arith.constant 0 : i32
    %c0_i32_1 = arith.constant 0 : i32
    return %c0_i32, %c0_i32_0 : i32, i32
  }
  func.func @transform_2(%arg0: i32) -> (i32, i32) {
    %c0_i32 = arith.constant 0 : i32
    %c0_i32_0 = arith.constant 0 : i32
    return %arg0, %c0_i32 : i32, i32
  }
  func.func @transform_3(%arg0: i32) -> (i32, i32) {
    %c0_i32 = arith.constant 0 : i32
    %c0_i32_0 = arith.constant 0 : i32
    return %arg0, %c0_i32 : i32, i32
  }
  func.func @transform_4(%arg0: i32) -> (i32, i32) {
    %c0_i32 = arith.constant 0 : i32
    %c0_i32_0 = arith.constant 0 : i32
    return %arg0, %c0_i32 : i32, i32
  }
  func.func @transform_5(%arg0: i32) -> (i32, i32) {
    %c0_i32 = arith.constant 0 : i32
    %c0_i32_0 = arith.constant 0 : i32
    return %arg0, %c0_i32 : i32, i32
  }
  func.func @transform_6(%arg0: i32) -> (i32, i32) {
    %c0_i32 = arith.constant 0 : i32
    %c0_i32_0 = arith.constant 0 : i32
    return %arg0, %c0_i32 : i32, i32
  }
  func.func @transform_7(%arg0: i32) -> (i32, i32) {
    %c0_i32 = arith.constant 0 : i32
    %c0_i32_0 = arith.constant 0 : i32
    return %arg0, %c0_i32 : i32, i32
  }
}

</mosaic_0001>

<bundles_post_ra>
// kernel: tpu_custom_call.1
= control target key start
LH: loop header
LB: loop body
LE: loop exit
PB: predicated region body
PF: predicated region fallthrough
CT: control target
= control target key end

     0   :  { %v606_v1 = vmov 0.0   ;;  %vm607_vm0 = vmmov 0   ;;  %vm47_vm1 = vcmask 261120   ;;  %s753_s0 = inlined_call_operand.vmem [shape: bf16[4,32,16], index: 0, kind: input, shape index: {}]   ;;  %s754_s1 = inlined_call_operand.vmem [shape: bf16[64,32], index: 1, kind: input, shape index: {}]   ;;  %s755_s2 = inlined_call_operand.vmem [shape: f32[16,32], index: 2, kind: input, shape index: {}]   ;;  %s756_s3 = inlined_call_operand.vmem [shape: f32[16,32], index: 3, kind: input, shape index: {}]   ;;  %s757_s4 = inlined_call_operand.vmem [shape: f32[16,32], index: 4, kind: input, shape index: {}]   ;;  %s758_s5 = inlined_call_operand.vmem [shape: f32[16,32], index: 5, kind: input, shape index: {}]   ;;  %s759_s6 = inlined_call_operand.vmem [shape: f32[16,32], index: 6, kind: input, shape index: {}]   ;;  %s760_s7 = inlined_call_operand.hbm [shape: f32[16,32], index: 7, kind: output, shape index: {}]  }
   0x1   :  { %v571_v0 = vld [vmem:[%s753_s0 + $0x8] sm:$0xff]   ;;  %519 = vmatprep.subr.bf16.mxu1 %v606_v1  ;;  %v572_v2 = vld [vmem:[%s753_s0] sm:$0xff]   ;;  %535 = vmatprep.subr.bf16.mxu0 %v606_v1  ;;  %v574_v8 = vld [vmem:[%s753_s0 + $0x18] sm:$0xff]  }
   0x2   :  { %520 = vmatpush3.bf16.msra.mxu1 %v571_v0  ;;  %523 = vmatprep.mubr.msk.bf16.mxu1 %vm607_vm0, %v606_v1  ;;  %v28_v3 = vld [vmem:[%s755_s2] sm:$0xff]  ;;  %v29_v4 = vld [vmem:[%s755_s2 + $0x8] sm:$0xff]  ;;  %v576_v12 = vld [vmem:[%s753_s0 + $0x10] sm:$0xff]  }
   0x3   :  { %521 = vmatprep.subr.bf16.mxu1 %v606_v1  ;;  %v573_v5 = vld [vmem:[%s753_s0 + $0x28] sm:$0xff]   ;;  %539 = vmatprep.mubr.msk.bf16.mxu0 %vm607_vm0, %v606_v1  ;;  %v30_v6 = vpack.c.bf16 %v29_v4, %v28_v3  ;;  %v575_v7 = vld [vmem:[%s753_s0 + $0x20] sm:$0xff]  }
   0x4   :  { %536 = vmatpush3.bf16.msra.mxu0 %v573_v5  ;;  %v186_v9 = vld [vmem:[%s757_s4] sm:$0xff]  ;;  %v187_v10 = vld [vmem:[%s757_s4 + $0x8] sm:$0xff] }
   0x5   :  { %537 = vmatprep.subr.bf16.mxu0 %v606_v1  ;;  %v188_v11 = vpack.c.bf16 %v187_v10, %v186_v9  ;;  %v105_v13 = vld [vmem:[%s756_s3] sm:$0xff]  ;;  %v106_v14 = vld [vmem:[%s756_s3 + $0x8] sm:$0xff] }
   0x6   :  { %522 = vmatpush3.bf16.msra.mxu1 %v572_v2  ;;  %v107_v15 = vpack.c.bf16 %v106_v14, %v105_v13 }
   0x7   :  { %527 = vmatprep.subr.bf16.mxu1 %v606_v1 }
   0x8   :  { %538 = vmatpush3.bf16.msra.mxu0 %v575_v7 }
   0x9   :  { %524 = vmatmul.mubr.msk.bf16.vlgmr.msra.gmra.mxu1 %vm47_vm1, %v30_v6  ;;  %551 = vmatprep.subr.bf16.mxu0 %v606_v1 }
   0xa   :  { %528 = vmatpush3.bf16.msra.mxu1 %v574_v8  ;;  %531 = vmatprep.mubr.msk.bf16.mxu1 %vm607_vm0, %v606_v1 }
   0xb   :  { %529 = vmatprep.subr.bf16.mxu1 %v606_v1  ;;  %540 = vmatmul.mubr.msk.bf16.vlgmr.msra.gmra.mxu0 %vm47_vm1, %v188_v11 }
   0xc   :  { %559 = vmatprep.mubr.msk.bf16.mxu0 %vm607_vm0, %v606_v1 }
   0xd   :  { %12 = vsyncpa [#allocation4], 0  ;;  %v577_v16 = vld [vmem:[%s753_s0 + $0x38] sm:$0xff]   ;;  %v578_v17 = vld [vmem:[%s753_s0 + $0x30] sm:$0xff]   ;;  %vm102_vm2 = vcmask 125952   ;;  %s609_s12 = smov 16  }
   0xe   :  { %530 = vmatpush3.bf16.msra.mxu1 %v576_v12  ;;  %v267_v18 = vld [vmem:[%s758_s5] sm:$0xff]  ;;  %v268_v19 = vld [vmem:[%s758_s5 + $0x8] sm:$0xff]  ;;  %v579_v28 = vld [vmem:[%s754_s1 + $0x18] sm:$0xff]   ;;  %s608_s5 = smov 32   ;;  %s610_s2 = smov 48   ;;  %vm183_vm3 = vcmask 257152  }
   0xf   :  { %543 = vmatprep.subr.bf16.mxu1 %v606_v1  ;;  %v269_v20 = vpack.c.bf16 %v268_v19, %v267_v18  ;;  %552 = vmatpush3.bf16.msra.mxu0 %v579_v28  ;;  %v580_v37 = vld [vmem:[%s754_s1 + $0x10] sm:$0xff]   ;;  %v581_v44 = vld [vmem:[%s754_s1 + $0x8] sm:$0xff]   ;;  %v582_v47 = vld [vmem:[%s754_s1] sm:$0xff]   ;;  %vm264_vm4 = vcmask 388352   ;;  %vm345_vm5 = vcmask 519552   ;;  %vm387_vm6 = vcmask 523264  }
  0x10   :  { %553 = vmatprep.subr.bf16.mxu0 %v606_v1  ;;  %s611_s16 = smov [#allocation3]   ;;  %v433_v6 = vld [vmem:[%s759_s6 + $0x8] sm:$0xff] }
  0x11   :  { %532 = vmatmul.mubr.msk.bf16.vlgmr.msra.gmra.mxu1 %vm47_vm1, %v107_v15  ;;  %s445_s17 = sshll.u32 %s611_s16, 4  ;;  %s446_s17 = int_to_ptr.vmem [resolvable:$true] %s445_s17 }
  0x12   :  { %544 = vmatpush3.bf16.msra.mxu1 %v577_v16  ;;  %547 = vmatprep.mubr.msk.bf16.mxu1 %vm607_vm0, %v606_v1  ;;  %s584_s20 = scalar_lea.vmem %s446_s17, 256  ;;  %p589_p1 = scmp.lt.s32.totalorder %s446_s17, %s446_s17 }
  0x13   :  { %545 = vmatprep.subr.bf16.mxu1 %v606_v1  ;;  %554 = vmatpush3.bf16.msra.mxu0 %v580_v37  ;;  %p585_p0 = scmp.ne.s32.totalorder %s446_s17, %s584_s20  ;;  %p590_p2 = scmp.lt.s32.totalorder %s584_s20, %s584_s20 }
  0x14   :  { %555 = vmatprep.subr.bf16.mxu0 %v606_v1 }
  0x15   :  { %p591_p3 = por %p590_p2, %p589_p1 }
  0x16   :  { %546 = vmatpush3.bf16.msra.mxu1 %v578_v17 }
  0x17   :  { %556 = vmatpush3.bf16.msra.mxu0 %v581_v44  ;;  %p592_p4 = pnand %p591_p3, %p585_p0 }
  0x18   :  { %557 = vmatprep.subr.bf16.mxu0 %v606_v1  ;;  %v432_v1 = vld [vmem:[%s759_s6] sm:$0xff] }
  0x19   :  { %548 = vmatmul.mubr.msk.bf16.vlgmr.msra.gmra.mxu1 %vm47_vm1, %v269_v20 }
  0x1b   :  { %558 = vmatpush3.bf16.msra.mxu0 %v582_v47 }
  0xc9   :  { %v85_v21 = vpop.f32.mrf.mxu1 }
  0xca   :  { %v92_v22 = vmax.f32 %v85_v21, 0.0 }
  0xcb   :  { %v525_v23 = vpop.f32.mrf.mxu1  ;;  %v243_v25 = vpop.f32.mrf.mxu0 }
  0xcc   :  { %v494_v24 = vpack.c.bf16 %v92_v22, %v92_v22  ;;  %v250_v27 = vmax.f32 %v243_v25, 0.0 }
  0xcd   :  { %v88_v26 = vpop.f32.mrf.mxu1  ;;  %v541_v30 = vpop.f32.mrf.mxu0 }
  0xce   :  { %103 = vst.msk [vmem:[#allocation2] sm:$0xf] %vm102_vm2, %v494_v24  ;;  %v93_v29 = vmax.f32 %v88_v26, 0.0  ;;  %v498_v32 = vpack.c.bf16 %v250_v27, %v250_v27 }
  0xcf   :  { %v526_v31 = vpop.f32.mrf.mxu1  ;;  %v246_v34 = vpop.f32.mrf.mxu0 }
  0xd0   :  { %v495_v33 = vpack.c.bf16 %v93_v29, %v93_v29  ;;  %v251_v36 = vmax.f32 %v246_v34, 0.0  ;;  %258 = vrot.lane.b32.xlu1 %v498_v32, %s608_s5 }
  0xd1   :  { %v162_v35 = vpop.f32.mrf.mxu1  ;;  %v542_v39 = vpop.f32.mrf.mxu0 }
  0xd2   :  { %104 = vst.msk [vmem:[#allocation2 + $0x4] sm:$0xf] %vm102_vm2, %v495_v33  ;;  %v169_v38 = vmax.f32 %v162_v35, 0.0  ;;  %v499_v41 = vpack.c.bf16 %v251_v36, %v251_v36 }
  0xd3   :  { %v533_v40 = vpop.f32.mrf.mxu1 }
  0xd4   :  { %v496_v42 = vpack.c.bf16 %v169_v38, %v169_v38  ;;  %260 = vrot.lane.b32.xlu1 %v499_v41, %s608_s5 }
  0xd5   :  { %v165_v43 = vpop.f32.mrf.mxu1 }
  0xd6   :  { %v170_v45 = vmax.f32 %v165_v43, 0.0  ;;  %177 = vrot.lane.b32.xlu0 %v496_v42, %s609_s12 }
  0xd7   :  { %v534_v46 = vpop.f32.mrf.mxu1 }
  0xd8   :  { %v497_v48 = vpack.c.bf16 %v170_v45, %v170_v45 }
  0xd9   :  { %v324_v49 = vpop.f32.mrf.mxu1 }
  0xda   :  { %v331_v50 = vmax.f32 %v324_v49, 0.0  ;;  %179 = vrot.lane.b32.xlu0 %v497_v48, %s609_s12 }
  0xdb   :  { %v549_v51 = vpop.f32.mrf.mxu1 }
  0xdc   :  { %v500_v52 = vpack.c.bf16 %v331_v50, %v331_v50 }
  0xdd   :  { %v327_v53 = vpop.f32.mrf.mxu1 }
  0xde   :  { %v332_v54 = vmax.f32 %v327_v53, 0.0  ;;  %339 = vrot.lane.b32.xlu0 %v500_v52, %s610_s2 }
  0xdf   :  { %v550_v55 = vpop.f32.mrf.mxu1 }
  0xe0   :  { %v501_v56 = vpack.c.bf16 %v332_v54, %v332_v54 }
  0xe2   :  { %341 = vrot.lane.b32.xlu1 %v501_v56, %s610_s2 }
 0x142   :  { %v259_v57 = vpop.permute.xlu1 %258 }
 0x146   :  { %v261_v59 = vpop.permute.xlu1 %260 }
 0x148   :  { %v178_v58 = vpop.permute.xlu0 %177 }
 0x149   :  { %184 = vst.msk [vmem:[#allocation2] sm:$0xf] %vm183_vm3, %v178_v58 }
 0x14a   :  { %265 = vst.msk [vmem:[#allocation2] sm:$0xf] %vm264_vm4, %v259_v57 }
 0x14c   :  { %v180_v60 = vpop.permute.xlu0 %179 }
 0x14d   :  { %185 = vst.msk [vmem:[#allocation2 + $0x4] sm:$0xf] %vm183_vm3, %v180_v60 }
 0x14e   :  { %266 = vst.msk [vmem:[#allocation2 + $0x4] sm:$0xf] %vm264_vm4, %v261_v59 }
 0x150   :  { %v340_v61 = vpop.permute.xlu0 %339 }
 0x151   :  { %346 = vst.msk [vmem:[#allocation2] sm:$0xf] %vm345_vm5, %v340_v61 }
 0x154   :  { %v342_v62 = vpop.permute.xlu1 %341 }
 0x155   :  { %347 = vst.msk [vmem:[#allocation2 + $0x4] sm:$0xf] %vm345_vm5, %v342_v62 }
 0x15c   :  { %v583_v63 = vld [vmem:[#allocation2] sm:$0xff]  }
 0x15d   :  { %560 = vmatmul.mubr.msk.bf16.vlgmr.msra.gmra.mxu0 %vm387_vm6, %v583_v63 }
 0x21d   :  { %v425_v0 = vpop.f32.mrf.mxu0 }
 0x21e   :  { %v434_v2 = vmax.f32 %v425_v0, 0.0 }
 0x21f   :  { %v561_v3 = vpop.f32.mrf.mxu0 }
 0x220   :  { %v436_v4 = vadd.f32 %v434_v2, %v432_v1 }
 0x221   :  { %v428_v5 = vpop.f32.mrf.mxu0 }
 0x222   :  { %438 = vst.msk [vmem:[#allocation3] sm:$0xff] %vm47_vm1, %v436_v4  ;;  %v435_v7 = vmax.f32 %v428_v5, 0.0 }
 0x223   :  { %v562_v8 = vpop.f32.mrf.mxu0 }
 0x224   :  { %v437_v9 = vadd.f32 %v435_v7, %v433_v6 }
 0x226   :  { %439 = vst.msk [vmem:[#allocation3 + $0x8] sm:$0xff] %vm47_vm1, %v437_v9 }
 0x227   :  { %595 = shalt.err (!%p592_p4)
}
 0x228   :  { %s612_s21 = smov 128   ;;  %s613_s22 = smov 8  }
 0x229   :  { %451 = dma.vmem_to_hbm [thread:$0]  %s446_s17, 256, %s760_s7, [#allocation4], %s612_s21, %s612_s21, %s613_s22  }
 0x22a   :  { %604 = dma.done.wait [#allocation4], 256  }
 0x22b   :  { %605 = vsyncadd [#allocation4], 4294967040 }
 0x22c   :  { %455 = vsyncpa [#allocation4], 1 }

// kernel: tpu_custom_call.1
= control target key start
LH: loop header
LB: loop body
LE: loop exit
PB: predicated region body
PF: predicated region fallthrough
CT: control target
= control target key end

     0   :  { %v606_v1 = vmov 0.0   ;;  %vm607_vm0 = vmmov 0   ;;  %vm47_vm1 = vcmask 261120   ;;  %s753_s0 = inlined_call_operand.vmem [shape: bf16[4,32,16], index: 0, kind: input, shape index: {}]   ;;  %s754_s1 = inlined_call_operand.vmem [shape: bf16[64,32], index: 1, kind: input, shape index: {}]   ;;  %s755_s2 = inlined_call_operand.vmem [shape: f32[16,32], index: 2, kind: input, shape index: {}]   ;;  %s756_s3 = inlined_call_operand.vmem [shape: f32[16,32], index: 3, kind: input, shape index: {}]   ;;  %s757_s4 = inlined_call_operand.vmem [shape: f32[16,32], index: 4, kind: input, shape index: {}]   ;;  %s758_s5 = inlined_call_operand.vmem [shape: f32[16,32], index: 5, kind: input, shape index: {}]   ;;  %s759_s6 = inlined_call_operand.vmem [shape: f32[16,32], index: 6, kind: input, shape index: {}]   ;;  %s760_s7 = inlined_call_operand.hbm [shape: f32[16,32], index: 7, kind: output, shape index: {}]  }
   0x1   :  { %v571_v0 = vld [vmem:[%s753_s0 + $0x8] sm:$0xff]   ;;  %519 = vmatprep.subr.bf16.mxu1 %v606_v1  ;;  %v572_v2 = vld [vmem:[%s753_s0] sm:$0xff]   ;;  %535 = vmatprep.subr.bf16.mxu0 %v606_v1  ;;  %v574_v8 = vld [vmem:[%s753_s0 + $0x18] sm:$0xff]  }
   0x2   :  { %520 = vmatpush3.bf16.msra.mxu1 %v571_v0  ;;  %523 = vmatprep.mubr.msk.bf16.mxu1 %vm607_vm0, %v606_v1  ;;  %v28_v3 = vld [vmem:[%s755_s2] sm:$0xff]  ;;  %v29_v4 = vld [vmem:[%s755_s2 + $0x8] sm:$0xff]  ;;  %v576_v12 = vld [vmem:[%s753_s0 + $0x10] sm:$0xff]  }
   0x3   :  { %521 = vmatprep.subr.bf16.mxu1 %v606_v1  ;;  %v573_v5 = vld [vmem:[%s753_s0 + $0x28] sm:$0xff]   ;;  %539 = vmatprep.mubr.msk.bf16.mxu0 %vm607_vm0, %v606_v1  ;;  %v30_v6 = vpack.c.bf16 %v29_v4, %v28_v3  ;;  %v575_v7 = vld [vmem:[%s753_s0 + $0x20] sm:$0xff]  }
   0x4   :  { %536 = vmatpush3.bf16.msra.mxu0 %v573_v5  ;;  %v186_v9 = vld [vmem:[%s757_s4] sm:$0xff]  ;;  %v187_v10 = vld [vmem:[%s757_s4 + $0x8] sm:$0xff] }
   0x5   :  { %537 = vmatprep.subr.bf16.mxu0 %v606_v1  ;;  %v188_v11 = vpack.c.bf16 %v187_v10, %v186_v9  ;;  %v105_v13 = vld [vmem:[%s756_s3] sm:$0xff]  ;;  %v106_v14 = vld [vmem:[%s756_s3 + $0x8] sm:$0xff] }
   0x6   :  { %522 = vmatpush3.bf16.msra.mxu1 %v572_v2  ;;  %v107_v15 = vpack.c.bf16 %v106_v14, %v105_v13 }
   0x7   :  { %527 = vmatprep.subr.bf16.mxu1 %v606_v1 }
   0x8   :  { %538 = vmatpush3.bf16.msra.mxu0 %v575_v7 }
   0x9   :  { %524 = vmatmul.mubr.msk.bf16.vlgmr.msra.gmra.mxu1 %vm47_vm1, %v30_v6  ;;  %551 = vmatprep.subr.bf16.mxu0 %v606_v1 }
   0xa   :  { %528 = vmatpush3.bf16.msra.mxu1 %v574_v8  ;;  %531 = vmatprep.mubr.msk.bf16.mxu1 %vm607_vm0, %v606_v1 }
   0xb   :  { %529 = vmatprep.subr.bf16.mxu1 %v606_v1  ;;  %540 = vmatmul.mubr.msk.bf16.vlgmr.msra.gmra.mxu0 %vm47_vm1, %v188_v11 }
   0xc   :  { %559 = vmatprep.mubr.msk.bf16.mxu0 %vm607_vm0, %v606_v1 }
   0xd   :  { %12 = vsyncpa [#allocation4], 0  ;;  %v577_v16 = vld [vmem:[%s753_s0 + $0x38] sm:$0xff]   ;;  %v578_v17 = vld [vmem:[%s753_s0 + $0x30] sm:$0xff]   ;;  %vm102_vm2 = vcmask 125952   ;;  %s609_s12 = smov 16  }
   0xe   :  { %530 = vmatpush3.bf16.msra.mxu1 %v576_v12  ;;  %v267_v18 = vld [vmem:[%s758_s5] sm:$0xff]  ;;  %v268_v19 = vld [vmem:[%s758_s5 + $0x8] sm:$0xff]  ;;  %v579_v28 = vld [vmem:[%s754_s1 + $0x18] sm:$0xff]   ;;  %s608_s5 = smov 32   ;;  %s610_s2 = smov 48   ;;  %vm183_vm3 = vcmask 257152  }
   0xf   :  { %543 = vmatprep.subr.bf16.mxu1 %v606_v1  ;;  %v269_v20 = vpack.c.bf16 %v268_v19, %v267_v18  ;;  %552 = vmatpush3.bf16.msra.mxu0 %v579_v28  ;;  %v580_v37 = vld [vmem:[%s754_s1 + $0x10] sm:$0xff]   ;;  %v581_v44 = vld [vmem:[%s754_s1 + $0x8] sm:$0xff]   ;;  %v582_v47 = vld [vmem:[%s754_s1] sm:$0xff]   ;;  %vm264_vm4 = vcmask 388352   ;;  %vm345_vm5 = vcmask 519552   ;;  %vm387_vm6 = vcmask 523264  }
  0x10   :  { %553 = vmatprep.subr.bf16.mxu0 %v606_v1  ;;  %s611_s16 = smov [#allocation3]   ;;  %v433_v6 = vld [vmem:[%s759_s6 + $0x8] sm:$0xff] }
  0x11   :  { %532 = vmatmul.mubr.msk.bf16.vlgmr.msra.gmra.mxu1 %vm47_vm1, %v107_v15  ;;  %s445_s17 = sshll.u32 %s611_s16, 4  ;;  %s446_s17 = int_to_ptr.vmem [resolvable:$true] %s445_s17 }
  0x12   :  { %544 = vmatpush3.bf16.msra.mxu1 %v577_v16  ;;  %547 = vmatprep.mubr.msk.bf16.mxu1 %vm607_vm0, %v606_v1  ;;  %s584_s20 = scalar_lea.vmem %s446_s17, 256  ;;  %p589_p1 = scmp.lt.s32.totalorder %s446_s17, %s446_s17 }
  0x13   :  { %545 = vmatprep.subr.bf16.mxu1 %v606_v1  ;;  %554 = vmatpush3.bf16.msra.mxu0 %v580_v37  ;;  %p585_p0 = scmp.ne.s32.totalorder %s446_s17, %s584_s20  ;;  %p590_p2 = scmp.lt.s32.totalorder %s584_s20, %s584_s20 }
  0x14   :  { %555 = vmatprep.subr.bf16.mxu0 %v606_v1 }
  0x15   :  { %p591_p3 = por %p590_p2, %p589_p1 }
  0x16   :  { %546 = vmatpush3.bf16.msra.mxu1 %v578_v17 }
  0x17   :  { %556 = vmatpush3.bf16.msra.mxu0 %v581_v44  ;;  %p592_p4 = pnand %p591_p3, %p585_p0 }
  0x18   :  { %557 = vmatprep.subr.bf16.mxu0 %v606_v1  ;;  %v432_v1 = vld [vmem:[%s759_s6] sm:$0xff] }
  0x19   :  { %548 = vmatmul.mubr.msk.bf16.vlgmr.msra.gmra.mxu1 %vm47_vm1, %v269_v20 }
  0x1b   :  { %558 = vmatpush3.bf16.msra.mxu0 %v582_v47 }
  0xc9   :  { %v85_v21 = vpop.f32.mrf.mxu1 }
  0xca   :  { %v92_v22 = vmax.f32 %v85_v21, 0.0 }
  0xcb   :  { %v525_v23 = vpop.f32.mrf.mxu1  ;;  %v243_v25 = vpop.f32.mrf.mxu0 }
  0xcc   :  { %v494_v24 = vpack.c.bf16 %v92_v22, %v92_v22  ;;  %v250_v27 = vmax.f32 %v243_v25, 0.0 }
  0xcd   :  { %v88_v26 = vpop.f32.mrf.mxu1  ;;  %v541_v30 = vpop.f32.mrf.mxu0 }
  0xce   :  { %103 = vst.msk [vmem:[#allocation2] sm:$0xf] %vm102_vm2, %v494_v24  ;;  %v93_v29 = vmax.f32 %v88_v26, 0.0  ;;  %v498_v32 = vpack.c.bf16 %v250_v27, %v250_v27 }
  0xcf   :  { %v526_v31 = vpop.f32.mrf.mxu1  ;;  %v246_v34 = vpop.f32.mrf.mxu0 }
  0xd0   :  { %v495_v33 = vpack.c.bf16 %v93_v29, %v93_v29  ;;  %v251_v36 = vmax.f32 %v246_v34, 0.0  ;;  %258 = vrot.lane.b32.xlu1 %v498_v32, %s608_s5 }
  0xd1   :  { %v162_v35 = vpop.f32.mrf.mxu1  ;;  %v542_v39 = vpop.f32.mrf.mxu0 }
  0xd2   :  { %104 = vst.msk [vmem:[#allocation2 + $0x4] sm:$0xf] %vm102_vm2, %v495_v33  ;;  %v169_v38 = vmax.f32 %v162_v35, 0.0  ;;  %v499_v41 = vpack.c.bf16 %v251_v36, %v251_v36 }
  0xd3   :  { %v533_v40 = vpop.f32.mrf.mxu1 }
  0xd4   :  { %v496_v42 = vpack.c.bf16 %v169_v38, %v169_v38  ;;  %260 = vrot.lane.b32.xlu1 %v499_v41, %s608_s5 }
  0xd5   :  { %v165_v43 = vpop.f32.mrf.mxu1 }
  0xd6   :  { %v170_v45 = vmax.f32 %v165_v43, 0.0  ;;  %177 = vrot.lane.b32.xlu0 %v496_v42, %s609_s12 }
  0xd7   :  { %v534_v46 = vpop.f32.mrf.mxu1 }
  0xd8   :  { %v497_v48 = vpack.c.bf16 %v170_v45, %v170_v45 }
  0xd9   :  { %v324_v49 = vpop.f32.mrf.mxu1 }
  0xda   :  { %v331_v50 = vmax.f32 %v324_v49, 0.0  ;;  %179 = vrot.lane.b32.xlu0 %v497_v48, %s609_s12 }
  0xdb   :  { %v549_v51 = vpop.f32.mrf.mxu1 }
  0xdc   :  { %v500_v52 = vpack.c.bf16 %v331_v50, %v331_v50 }
  0xdd   :  { %v327_v53 = vpop.f32.mrf.mxu1 }
  0xde   :  { %v332_v54 = vmax.f32 %v327_v53, 0.0  ;;  %339 = vrot.lane.b32.xlu0 %v500_v52, %s610_s2 }
  0xdf   :  { %v550_v55 = vpop.f32.mrf.mxu1 }
  0xe0   :  { %v501_v56 = vpack.c.bf16 %v332_v54, %v332_v54 }
  0xe2   :  { %341 = vrot.lane.b32.xlu1 %v501_v56, %s610_s2 }
 0x142   :  { %v259_v57 = vpop.permute.xlu1 %258 }
 0x146   :  { %v261_v59 = vpop.permute.xlu1 %260 }
 0x148   :  { %v178_v58 = vpop.permute.xlu0 %177 }
 0x149   :  { %184 = vst.msk [vmem:[#allocation2] sm:$0xf] %vm183_vm3, %v178_v58 }
 0x14a   :  { %265 = vst.msk [vmem:[#allocation2] sm:$0xf] %vm264_vm4, %v259_v57 }
 0x14c   :  { %v180_v60 = vpop.permute.xlu0 %179 }
 0x14d   :  { %185 = vst.msk [vmem:[#allocation2 + $0x4] sm:$0xf] %vm183_vm3, %v180_v60 }
 0x14e   :  { %266 = vst.msk [vmem:[#allocation2 + $0x4] sm:$0xf] %vm264_vm4, %v261_v59 }
 0x150   :  { %v340_v61 = vpop.permute.xlu0 %339 }
 0x151   :  { %346 = vst.msk [vmem:[#allocation2] sm:$0xf] %vm345_vm5, %v340_v61 }
 0x154   :  { %v342_v62 = vpop.permute.xlu1 %341 }
 0x155   :  { %347 = vst.msk [vmem:[#allocation2 + $0x4] sm:$0xf] %vm345_vm5, %v342_v62 }
 0x15c   :  { %v583_v63 = vld [vmem:[#allocation2] sm:$0xff]  }
 0x15d   :  { %560 = vmatmul.mubr.msk.bf16.vlgmr.msra.gmra.mxu0 %vm387_vm6, %v583_v63 }
 0x21d   :  { %v425_v0 = vpop.f32.mrf.mxu0 }
 0x21e   :  { %v434_v2 = vmax.f32 %v425_v0, 0.0 }
 0x21f   :  { %v561_v3 = vpop.f32.mrf.mxu0 }
 0x220   :  { %v436_v4 = vadd.f32 %v434_v2, %v432_v1 }
 0x221   :  { %v428_v5 = vpop.f32.mrf.mxu0 }
 0x222   :  { %438 = vst.msk [vmem:[#allocation3] sm:$0xff] %vm47_vm1, %v436_v4  ;;  %v435_v7 = vmax.f32 %v428_v5, 0.0 }
 0x223   :  { %v562_v8 = vpop.f32.mrf.mxu0 }
 0x224   :  { %v437_v9 = vadd.f32 %v435_v7, %v433_v6 }
 0x226   :  { %439 = vst.msk [vmem:[#allocation3 + $0x8] sm:$0xff] %vm47_vm1, %v437_v9 }
 0x227   :  { %595 = shalt.err (!%p592_p4)
}
 0x228   :  { %s612_s21 = smov 128   ;;  %s613_s22 = smov 8  }
 0x229   :  { %451 = dma.vmem_to_hbm [thread:$0]  %s446_s17, 256, %s760_s7, [#allocation4], %s612_s21, %s612_s21, %s613_s22  }
 0x22a   :  { %604 = dma.done.wait [#allocation4], 256  }
 0x22b   :  { %605 = vsyncadd [#allocation4], 4294967040 }
 0x22c   :  { %455 = vsyncpa [#allocation4], 1 }

</bundles_post_ra>
